<compile_context>
chip_gen: v6e
topology: v6e:2x2x1
jax: 0.10.0
libtpu: 0.0.40
codegen_flags: <defaults>
</compile_context>

<pallas_src>
import functools
import math

import jax
import jax.numpy as jnp
from jax import lax
from jax.experimental import pallas as pl
from jax.experimental.pallas import tpu as pltpu


def _head_flash_kernel(xq_ref, xk_ref, wq_ref, wkv_ref, o_ref,
                       q_sc, m_sc, l_sc, acc_sc, *, scale):
    """One grid step = (batch b, q-tile qi, kv-tile ki)."""
    qi = pl.program_id(1)
    ki = pl.program_id(2)
    nk = pl.num_programs(2)

    tq, c_pad = acc_sc.shape
    tk = xk_ref.shape[0]

    # ---- per-q-tile init: project Q once, reset online-softmax state --------
    @pl.when(ki == 0)
    def _init():
        # Wq is pre-transposed on the host: q = x_q @ Wq_t  (no in-kernel .T)
        q_sc[...] = jnp.dot(xq_ref[...], wq_ref[...],
                            preferred_element_type=jnp.float32).astype(q_sc.dtype)
        m_sc[...] = jnp.full_like(m_sc, -jnp.inf)
        l_sc[...] = jnp.zeros_like(l_sc)
        acc_sc[...] = jnp.zeros_like(acc_sc)

    # ---- skip kv blocks that are entirely above the causal diagonal ---------
    q_last_row = qi * tq + (tq - 1)
    k_first_col = ki * tk

    @pl.when(k_first_col <= q_last_row)
    def _compute():
        # Fused K/V projection for this kv tile (one wide MXU matmul, N = 2*C_pad).
        kv = jnp.dot(xk_ref[...], wkv_ref[...],
                     preferred_element_type=jnp.float32)          # (tk, 2*C_pad)
        k = kv[:, :c_pad]
        v = kv[:, c_pad:]

        # Scores q @ k^T, expressed without an explicit transpose of k.
        s = lax.dot_general(q_sc[...], k, (((1,), (1,)), ((), ())),
                            preferred_element_type=jnp.float32) * scale  # (tq, tk)

        # Causal mask in global coordinates.
        row = qi * tq + lax.broadcasted_iota(jnp.int32, (tq, tk), 0)
        col = ki * tk + lax.broadcasted_iota(jnp.int32, (tq, tk), 1)
        s = jnp.where(col <= row, s, -jnp.inf)

        # Online softmax update.
        m_prev = m_sc[...]
        m_new = jnp.maximum(m_prev, jnp.max(s, axis=-1, keepdims=True))
        alpha = jnp.exp(m_prev - m_new)
        p = jnp.exp(s - m_new)
        l_sc[...] = alpha * l_sc[...] + jnp.sum(p, axis=-1, keepdims=True)
        acc_sc[...] = alpha * acc_sc[...] + jnp.dot(
            p.astype(v.dtype), v, preferred_element_type=jnp.float32)
        m_sc[...] = m_new

    # ---- finalize on the last kv step ----------------------------------------
    @pl.when(ki == nk - 1)
    def _finalize():
        inv_l = pl.reciprocal(l_sc[...], approx=True)   # EUP reciprocal (near free)
        o_ref[...] = (acc_sc[...] * inv_l).astype(o_ref.dtype)


def _pick_tile(t, pref=128):
    """Largest tile <= pref that divides t (falls back to whole axis)."""
    if t <= pref:
        return t
    for cand in (pref, 64, 32, 16, 8):
        if t % cand == 0:
            return cand
    return t


@jax.jit
def head_forward(x, wk, wq, wv):
    """x: (B, T, C); wk/wq/wv: (C, C) in PyTorch (out, in) layout."""
    B, T, C = x.shape
    scale = float(C) ** -0.5                     # scale uses the *original* C

    # Pad the channel dim to a multiple of 128 -> lane-dense loads/stores/MXU.
    C_pad = max(128, ((C + 127) // 128) * 128)
    pad_c = C_pad - C

    x_p = jnp.pad(x, ((0, 0), (0, 0), (0, pad_c)))

    def _pad_w_t(w):  # (out, in) -> transposed (in, out), zero-padded to (C_pad, C_pad)
        return jnp.pad(w.T, ((0, pad_c), (0, pad_c)))

    wq_t = _pad_w_t(wq)                                   # (C_pad, C_pad)
    wkv_t = jnp.concatenate([_pad_w_t(wk), _pad_w_t(wv)], axis=1)  # (C_pad, 2*C_pad)

    tq = _pick_tile(T)
    tk = _pick_tile(T)
    nq = T // tq
    nk = T // tk

    flops = int(2 * B * (T * C_pad * C_pad                # Q projection
                         + nq * T * 2 * C_pad * C_pad     # fused K/V projection
                         + T * T * C_pad                  # scores
                         + T * T * C_pad))                # P @ V
    transcendentals = int(B * T * T)
    bytes_accessed = int(4 * (2 * B * T * C_pad + 3 * C_pad * C_pad + B * T * C_pad))

    out_p = pl.pallas_call(
        functools.partial(_head_flash_kernel, scale=scale),
        out_shape=jax.ShapeDtypeStruct((B, T, C_pad), x.dtype),
        grid_spec=pltpu.PrefetchScalarGridSpec(
            num_scalar_prefetch=0,
            grid=(B, nq, nk),
            in_specs=[
                # q-rows tile of x
                pl.BlockSpec((pl.Squeezed(), tq, C_pad), lambda b, qi, ki: (b, qi, 0)),
                # kv-rows tile of x
                pl.BlockSpec((pl.Squeezed(), tk, C_pad), lambda b, qi, ki: (b, ki, 0)),
                # pre-transposed Wq
                pl.BlockSpec((C_pad, C_pad), lambda b, qi, ki: (0, 0)),
                # fused pre-transposed [Wk | Wv]
                pl.BlockSpec((C_pad, 2 * C_pad), lambda b, qi, ki: (0, 0)),
            ],
            out_specs=pl.BlockSpec((pl.Squeezed(), tq, C_pad),
                                   lambda b, qi, ki: (b, qi, 0)),
            scratch_shapes=[
                pltpu.VMEM((tq, C_pad), x.dtype),      # q tile
                pltpu.VMEM((tq, 1), jnp.float32),      # running max
                pltpu.VMEM((tq, 1), jnp.float32),      # running denom
                pltpu.VMEM((tq, C_pad), jnp.float32),  # output accumulator
            ],
        ),
        compiler_params=pltpu.CompilerParams(
            dimension_semantics=("parallel", "parallel", "arbitrary"),
            vmem_limit_bytes=48 * 1024 * 1024,
        ),
        cost_estimate=pl.CostEstimate(
            flops=flops,
            transcendentals=transcendentals,
            bytes_accessed=bytes_accessed,
        ),
    )(x_p, x_p, wq_t, wkv_t)

    # Drop the channel padding.
    return out_p[..., :C]

    # TODO(synk): nn.Dropout(0.1) is identity in eval mode; training-mode RNG
    # dropout (pltpu.prng_seed + prng_random_bits) is not implemented here.


def _reference(x, wk, wq, wv):
    """Pure-JAX reference matching the PyTorch forward (eval mode)."""
    B, T, C = x.shape
    k = x @ wk.T
    q = x @ wq.T
    v = x @ wv.T
    wei = (q @ jnp.swapaxes(k, -2, -1)) * (C ** -0.5)
    tril = jnp.tril(jnp.ones((T, T), dtype=x.dtype))
    wei = jnp.where(tril == 0, -jnp.inf, wei)
    wei = jax.nn.softmax(wei, axis=-1)
    return wei @ v


if __name__ == "__main__":
    B, T, C = 2, 8, 32  # batch, sequence length, n_embd

    key = jax.random.PRNGKey(0)
    kx, kk, kq, kv = jax.random.split(key, 4)

    x = jax.random.normal(kx, (B, T, C), dtype=jnp.float32)

    # Deterministic parameter init mimicking nn.Linear's uniform(-1/sqrt(C), 1/sqrt(C))
    bound = 1.0 / math.sqrt(C)
    wk = jax.random.uniform(kk, (C, C), minval=-bound, maxval=bound, dtype=jnp.float32)
    wq = jax.random.uniform(kq, (C, C), minval=-bound, maxval=bound, dtype=jnp.float32)
    wv = jax.random.uniform(kv, (C, C), minval=-bound, maxval=bound, dtype=jnp.float32)

    out = head_forward(x, wk, wq, wv)
    out = jax.block_until_ready(out)

    ref = _reference(x, wk, wq, wv)
    assert out.shape == (B, T, C)
    # Tolerance slightly relaxed vs 1e-5 because of the EUP approximate reciprocal
    # used for the softmax normalization.
    assert jnp.allclose(out, ref, atol=2e-3, rtol=2e-3), "mismatch vs reference"

    print("KERNEL_OK")
</pallas_src>

<mosaic_0001>
module attributes {stable_mosaic.version = 11 : i64} {
  func.func @_head_flash_kernel(%arg0: i32, %arg1: i32, %arg2: i32, %arg3: memref<1x8x128xf32, #tpu.memory_space<vmem>>, %arg4: memref<1x8x128xf32, #tpu.memory_space<vmem>>, %arg5: memref<128x128xf32, #tpu.memory_space<vmem>>, %arg6: memref<128x256xf32, #tpu.memory_space<vmem>>, %arg7: memref<1x8x128xf32, #tpu.memory_space<vmem>>, %arg8: memref<8x128xf32, #tpu.memory_space<vmem>>, %arg9: memref<8x1xf32, #tpu.memory_space<vmem>>, %arg10: memref<8x1xf32, #tpu.memory_space<vmem>>, %arg11: memref<8x128xf32, #tpu.memory_space<vmem>>) attributes {dimension_semantics = [#tpu.dimension_semantics<parallel>, #tpu.dimension_semantics<parallel>, #tpu.dimension_semantics<arbitrary>], iteration_bounds = array<i64: 2, 1, 1>, scalar_prefetch = 0 : i64, scratch_operands = 4 : i64, tpu.core_type = #tpu.core_type<tc>, window_params = [{transform_indices = @transform_0, window_bounds = array<i64: 1, 8, 128>}, {transform_indices = @transform_1, window_bounds = array<i64: 1, 8, 128>}, {pipeline_mode = #tpu.pipeline_mode<synchronous>, transform_indices = @transform_2, window_bounds = array<i64: 128, 128>}, {pipeline_mode = #tpu.pipeline_mode<synchronous>, transform_indices = @transform_3, window_bounds = array<i64: 128, 256>}, {transform_indices = @transform_4, window_bounds = array<i64: 1, 8, 128>}]} {
    %c0_i32 = arith.constant 0 : i32
    %0 = arith.cmpi eq, %arg2, %c0_i32 : i32
    %1 = arith.extui %0 : i1 to i32
    %c0_i32_0 = arith.constant 0 : i32
    %2 = arith.cmpi ne, %1, %c0_i32_0 : i32
    scf.if %2 {
      %c0 = arith.constant 0 : index
      %c0_5 = arith.constant 0 : index
      %c0_6 = arith.constant 0 : index
      %12 = vector.load %arg3[%c0, %c0_5, %c0_6] : memref<1x8x128xf32, #tpu.memory_space<vmem>>, vector<1x8x128xf32>
      %13 = vector.shape_cast %12 : vector<1x8x128xf32> to vector<8x128xf32>
      %c0_7 = arith.constant 0 : index
      %c0_8 = arith.constant 0 : index
      %14 = vector.load %arg5[%c0_7, %c0_8] : memref<128x128xf32, #tpu.memory_space<vmem>>, vector<128x128xf32>
      %cst = arith.constant dense<0.000000e+00> : vector<8x128xf32>
      %15 = tpu.matmul %13, %14, %cst {dimension_numbers = #tpu.dot_dimension_numbers<[1], [0], [0], [1], [0, 0, 1, 1], [], []>} : vector<8x128xf32>, vector<128x128xf32>, vector<8x128xf32> -> vector<8x128xf32>
      %c0_9 = arith.constant 0 : index
      %c0_10 = arith.constant 0 : index
      %16 = vector.load %arg8[%c0_9, %c0_10] : memref<8x128xf32, #tpu.memory_space<vmem>>, vector<8x128xf32>
      tpu.vector_store %arg8[%c0_9, %c0_10], %15 {strides = array<i32>} : memref<8x128xf32, #tpu.memory_space<vmem>>, vector<8x128xf32>,
      %cst_11 = arith.constant 0xFF800000 : f32
      %17 = vector.broadcast %cst_11 : f32 to vector<8x1xf32>
      %c0_12 = arith.constant 0 : index
      %c0_13 = arith.constant 0 : index
      %18 = vector.load %arg9[%c0_12, %c0_13] : memref<8x1xf32, #tpu.memory_space<vmem>>, vector<8x1xf32>
      tpu.vector_store %arg9[%c0_12, %c0_13], %17 {strides = array<i32>} : memref<8x1xf32, #tpu.memory_space<vmem>>, vector<8x1xf32>,
      %cst_14 = arith.constant 0.000000e+00 : f32
      %19 = vector.broadcast %cst_14 : f32 to vector<8x1xf32>
      %c0_15 = arith.constant 0 : index
      %c0_16 = arith.constant 0 : index
      %20 = vector.load %arg10[%c0_15, %c0_16] : memref<8x1xf32, #tpu.memory_space<vmem>>, vector<8x1xf32>
      tpu.vector_store %arg10[%c0_15, %c0_16], %19 {strides = array<i32>} : memref<8x1xf32, #tpu.memory_space<vmem>>, vector<8x1xf32>,
      %cst_17 = arith.constant 0.000000e+00 : f32
      %21 = vector.broadcast %cst_17 : f32 to vector<8x128xf32>
      %c0_18 = arith.constant 0 : index
      %c0_19 = arith.constant 0 : index
      %22 = vector.load %arg11[%c0_18, %c0_19] : memref<8x128xf32, #tpu.memory_space<vmem>>, vector<8x128xf32>
      tpu.vector_store %arg11[%c0_18, %c0_19], %21 {strides = array<i32>} : memref<8x128xf32, #tpu.memory_space<vmem>>, vector<8x128xf32>,
    } else {
    }
    %c8_i32 = arith.constant 8 : i32
    %3 = arith.muli %arg1, %c8_i32 : i32
    %c7_i32 = arith.constant 7 : i32
    %4 = arith.addi %3, %c7_i32 : i32
    %c8_i32_1 = arith.constant 8 : i32
    %5 = arith.muli %arg2, %c8_i32_1 : i32
    %6 = arith.cmpi sle, %5, %4 : i32
    %7 = arith.extui %6 : i1 to i32
    %c0_i32_2 = arith.constant 0 : i32
    %8 = arith.cmpi ne, %7, %c0_i32_2 : i32
    scf.if %8 {
      %c0 = arith.constant 0 : index
      %c0_5 = arith.constant 0 : index
      %c0_6 = arith.constant 0 : index
      %12 = vector.load %arg4[%c0, %c0_5, %c0_6] : memref<1x8x128xf32, #tpu.memory_space<vmem>>, vector<1x8x128xf32>
      %13 = vector.shape_cast %12 : vector<1x8x128xf32> to vector<8x128xf32>
      %c0_7 = arith.constant 0 : index
      %c0_8 = arith.constant 0 : index
      %14 = vector.load %arg6[%c0_7, %c0_8] : memref<128x256xf32, #tpu.memory_space<vmem>>, vector<128x256xf32>
      %cst = arith.constant dense<0.000000e+00> : vector<8x256xf32>
      %15 = tpu.matmul %13, %14, %cst {dimension_numbers = #tpu.dot_dimension_numbers<[1], [0], [0], [1], [0, 0, 1, 1], [], []>} : vector<8x128xf32>, vector<128x256xf32>, vector<8x256xf32> -> vector<8x256xf32>
      %16 = vector.extract_strided_slice %15 {offsets = [0, 0], sizes = [8, 128], strides = [1, 1]} : vector<8x256xf32> to vector<8x128xf32>
      %17 = vector.extract_strided_slice %15 {offsets = [0, 128], sizes = [8, 128], strides = [1, 1]} : vector<8x256xf32> to vector<8x128xf32>
      %c0_9 = arith.constant 0 : index
      %c0_10 = arith.constant 0 : index
      %18 = vector.load %arg8[%c0_9, %c0_10] : memref<8x128xf32, #tpu.memory_space<vmem>>, vector<8x128xf32>
      %cst_11 = arith.constant dense<0.000000e+00> : vector<8x8xf32>
      %19 = tpu.matmul %18, %16, %cst_11 {dimension_numbers = #tpu.dot_dimension_numbers<[1], [1], [0], [0], [0, 0, 1, 0], [], []>} : vector<8x128xf32>, vector<8x128xf32>, vector<8x8xf32> -> vector<8x8xf32>
      %cst_12 = arith.constant 0.176776692 : f32
      %20 = vector.broadcast %cst_12 : f32 to vector<8x8xf32>
      %21 = arith.mulf %19, %20 : vector<8x8xf32>
      %c8_i32_13 = arith.constant 8 : i32
      %22 = arith.muli %arg1, %c8_i32_13 : i32
      %23 = tpu.iota {dimensions = array<i32: 0>} : vector<8x8xi32>
      %24 = vector.broadcast %22 : i32 to vector<8x8xi32>
      %25 = arith.addi %24, %23 : vector<8x8xi32>
      %c8_i32_14 = arith.constant 8 : i32
      %26 = arith.muli %arg2, %c8_i32_14 : i32
      %27 = tpu.iota {dimensions = array<i32: 1>} : vector<8x8xi32>
      %28 = vector.broadcast %26 : i32 to vector<8x8xi32>
      %29 = arith.addi %28, %27 : vector<8x8xi32>
      %30 = arith.cmpi sle, %29, %25 : vector<8x8xi32>
      %cst_15 = arith.constant 0xFF800000 : f32
      %31 = vector.broadcast %cst_15 : f32 to vector<8x8xf32>
      %32 = arith.select %30, %21, %31 : vector<8x8xi1>, vector<8x8xf32>
      %c0_16 = arith.constant 0 : index
      %c0_17 = arith.constant 0 : index
      %33 = vector.load %arg9[%c0_16, %c0_17] : memref<8x1xf32, #tpu.memory_space<vmem>>, vector<8x1xf32>
      %cst_18 = arith.constant dense<0xFF800000> : vector<8xf32>
      %34 = vector.multi_reduction <maximumf>, %32, %cst_18 [1] : vector<8x8xf32> to vector<8xf32>
      %35 = vector.shape_cast %34 : vector<8xf32> to vector<8x1xf32>
      %36 = arith.maximumf %33, %35 : vector<8x1xf32>
      %37 = arith.subf %33, %36 : vector<8x1xf32>
      %38 = math.exp %37 : vector<8x1xf32>
      %39 = vector.broadcast %36 : vector<8x1xf32> to vector<8x8xf32>
      %40 = arith.subf %32, %39 : vector<8x8xf32>
      %41 = math.exp %40 : vector<8x8xf32>
      %c0_19 = arith.constant 0 : index
      %c0_20 = arith.constant 0 : index
      %42 = vector.load %arg10[%c0_19, %c0_20] : memref<8x1xf32, #tpu.memory_space<vmem>>, vector<8x1xf32>
      %43 = arith.mulf %38, %42 : vector<8x1xf32>
      %cst_21 = arith.constant dense<0.000000e+00> : vector<8xf32>
      %44 = vector.multi_reduction <add>, %41, %cst_21 [1] : vector<8x8xf32> to vector<8xf32>
      %45 = vector.shape_cast %44 : vector<8xf32> to vector<8x1xf32>
      %46 = arith.addf %43, %45 : vector<8x1xf32>
      %c0_22 = arith.constant 0 : index
      %c0_23 = arith.constant 0 : index
      %47 = vector.load %arg10[%c0_22, %c0_23] : memref<8x1xf32, #tpu.memory_space<vmem>>, vector<8x1xf32>
      tpu.vector_store %arg10[%c0_22, %c0_23], %46 {strides = array<i32>} : memref<8x1xf32, #tpu.memory_space<vmem>>, vector<8x1xf32>,
      %c0_24 = arith.constant 0 : index
      %c0_25 = arith.constant 0 : index
      %48 = vector.load %arg11[%c0_24, %c0_25] : memref<8x128xf32, #tpu.memory_space<vmem>>, vector<8x128xf32>
      %49 = vector.broadcast %38 : vector<8x1xf32> to vector<8x128xf32>
      %50 = arith.mulf %49, %48 : vector<8x128xf32>
      %cst_26 = arith.constant dense<0.000000e+00> : vector<8x128xf32>
      %51 = tpu.matmul %41, %17, %cst_26 {dimension_numbers = #tpu.dot_dimension_numbers<[1], [0], [0], [1], [0, 0, 1, 1], [], []>} : vector<8x8xf32>, vector<8x128xf32>, vector<8x128xf32> -> vector<8x128xf32>
      %52 = arith.addf %50, %51 : vector<8x128xf32>
      %c0_27 = arith.constant 0 : index
      %c0_28 = arith.constant 0 : index
      %53 = vector.load %arg11[%c0_27, %c0_28] : memref<8x128xf32, #tpu.memory_space<vmem>>, vector<8x128xf32>
      tpu.vector_store %arg11[%c0_27, %c0_28], %52 {strides = array<i32>} : memref<8x128xf32, #tpu.memory_space<vmem>>, vector<8x128xf32>,
      %c0_29 = arith.constant 0 : index
      %c0_30 = arith.constant 0 : index
      %54 = vector.load %arg9[%c0_29, %c0_30] : memref<8x1xf32, #tpu.memory_space<vmem>>, vector<8x1xf32>
      tpu.vector_store %arg9[%c0_29, %c0_30], %36 {strides = array<i32>} : memref<8x1xf32, #tpu.memory_space<vmem>>, vector<8x1xf32>,
    } else {
    }
    %c0_i32_3 = arith.constant 0 : i32
    %9 = arith.cmpi eq, %arg2, %c0_i32_3 : i32
    %10 = arith.extui %9 : i1 to i32
    %c0_i32_4 = arith.constant 0 : i32
    %11 = arith.cmpi ne, %10, %c0_i32_4 : i32
    scf.if %11 {
      %c0 = arith.constant 0 : index
      %c0_5 = arith.constant 0 : index
      %12 = vector.load %arg10[%c0, %c0_5] : memref<8x1xf32, #tpu.memory_space<vmem>>, vector<8x1xf32>
      %13 = tpu.reciprocal %12 {approx = true} : vector<8x1xf32> -> vector<8x1xf32>
      %c0_6 = arith.constant 0 : index
      %c0_7 = arith.constant 0 : index
      %14 = vector.load %arg11[%c0_6, %c0_7] : memref<8x128xf32, #tpu.memory_space<vmem>>, vector<8x128xf32>
      %15 = vector.broadcast %13 : vector<8x1xf32> to vector<8x128xf32>
      %16 = arith.mulf %14, %15 : vector<8x128xf32>
      %c0_8 = arith.constant 0 : index
      %c0_9 = arith.constant 0 : index
      %c0_10 = arith.constant 0 : index
      %17 = vector.load %arg7[%c0_8, %c0_9, %c0_10] : memref<1x8x128xf32, #tpu.memory_space<vmem>>, vector<1x8x128xf32>
      %18 = vector.shape_cast %17 : vector<1x8x128xf32> to vector<8x128xf32>
      %19 = vector.shape_cast %16 : vector<8x128xf32> to vector<1x8x128xf32>
      tpu.vector_store %arg7[%c0_8, %c0_9, %c0_10], %19 {strides = array<i32>} : memref<1x8x128xf32, #tpu.memory_space<vmem>>, vector<1x8x128xf32>,
    } else {
    }
    return
  }
  func.func @transform_0(%arg0: i32, %arg1: i32, %arg2: i32) -> (i32, i32, i32) {
    %c0_i32 = arith.constant 0 : i32
    %c0_i32_0 = arith.constant 0 : i32
    return %arg0, %arg1, %c0_i32 : i32, i32, i32
  }
  func.func @transform_1(%arg0: i32, %arg1: i32, %arg2: i32) -> (i32, i32, i32) {
    %c0_i32 = arith.constant 0 : i32
    %c0_i32_0 = arith.constant 0 : i32
    return %arg0, %arg2, %c0_i32 : i32, i32, i32
  }
  func.func @transform_2(%arg0: i32, %arg1: i32, %arg2: i32) -> (i32, i32) {
    %c0_i32 = arith.constant 0 : i32
    %c0_i32_0 = arith.constant 0 : i32
    %c0_i32_1 = arith.constant 0 : i32
    return %c0_i32, %c0_i32_0 : i32, i32
  }
  func.func @transform_3(%arg0: i32, %arg1: i32, %arg2: i32) -> (i32, i32) {
    %c0_i32 = arith.constant 0 : i32
    %c0_i32_0 = arith.constant 0 : i32
    %c0_i32_1 = arith.constant 0 : i32
    return %c0_i32, %c0_i32_0 : i32, i32
  }
  func.func @transform_4(%arg0: i32, %arg1: i32, %arg2: i32) -> (i32, i32, i32) {
    %c0_i32 = arith.constant 0 : i32
    %c0_i32_0 = arith.constant 0 : i32
    return %arg0, %arg1, %c0_i32 : i32, i32, i32
  }
}

</mosaic_0001>

<bundles_post_ra>
// kernel: head_forward.1
= control target key start
LH: loop header
LB: loop body
LE: loop exit
PB: predicated region body
PF: predicated region fallthrough
CT: control target
= control target key end

     0   :  { %9 = vsyncpa [#allocation7], 0  ;;  %s1302_s0 = inlined_call_operand.vmem [shape: f32[2,8,128], index: 0, kind: input, shape index: {}, may-alias: {0,1}]   ;;  %s1303_s1 = inlined_call_operand.vmem [shape: f32[2,8,128], index: 1, kind: input, shape index: {}, may-alias: {0,1}]   ;;  %s1304_s2 = inlined_call_operand.vmem [shape: f32[128,128], index: 2, kind: input, shape index: {}]   ;;  %s1305_s3 = inlined_call_operand.vmem [shape: f32[128,256], index: 3, kind: input, shape index: {}]   ;;  %s1306_s4 = inlined_call_operand.hbm [shape: f32[2,8,128], index: 4, kind: output, shape index: {}]  }
   0x1   :  { %11 = vsyncpa [#allocation7 + $0x1], 0  ;;  %s1021_s15 = smov 0   ;;  %s1023_s16 = smov 0  }
   0x2   :  { %s1025_s17 = smov 0   ;;  %s1027_s18 = smov 0  }
   0x3   :  { %s1029_s19 = smov 0   ;;  %s1031_s20 = smov 0  }
   0x4 LB: > { %s767_s21 = sadd.s32 4294967295, %s989_s20   ;;  %s768_s22 = sadd.s32 4294967294, %s989_s20   ;;  %s989_s20 = sphi %s1031_s20, %s17_s20   ;;  %s985_s19 = sphi %s1029_s19, %s1313_s19   ;;  %s981_s18 = sphi %s1027_s18, %s1312_s18   ;;  %s977_s17 = sphi %s1025_s17, %s1311_s17   ;;  %s973_s16 = sphi %s1023_s16, %s1310_s16   ;;  %s969_s15 = sphi %s1021_s15, %s1309_s15  }
   0x5   : > { %s36_s23 = sadd.s32 1, %s985_s19  ;;  %s143_s24 = sadd.s32 1, %s977_s17 }
   0x6   : > { %p38_p0 = scmp.ge.s32.totalorder %s36_s23, 2  ;;  %p153_p1 = scmp.ne.s32.totalorder %s977_s17, %s973_s16 }
   0x7   : > { %p154_p2 = scmp.eq.s32.totalorder %s767_s21, 1  ;;  %p159_p3 = scmp.ne.s32.totalorder %s973_s16, %s969_s15 }
   0x8   : > { %s1315_s23 = smov (%p38_p0, %s36_s23), 0  ;;  %p160_p5 = scmp.eq.s32.totalorder %s768_s22, 1 }
   0x9   : > { %p1061_p4 = por %p154_p2, %p153_p1  ;;  %s138_s26 = ssub.s32 %s985_s19, %s1315_s23 }
   0xa   : > { %p771_p6 = scmp.ge.s32.totalorder %s989_s20, 1  ;;  %p141_p7 = scmp.eq.s32.totalorder %s138_s26, 0 }
   0xb   : > { %p1068_p8 = por %p160_p5, %p159_p3  ;;  %p204_p9 = scmp.lt.s32.totalorder %s989_s20, 3 }
   0xc   : > { %s1074_s28 = scalar_select %p141_p7, %s977_s17, %s143_s24  }
   0xd   : > { %p205_p10 = pnand %p771_p6, %p204_p9 }
   0xe   : > { %p239_p11 = scmp.lt.s32.totalorder (!%p205_p10), %s981_s18, 1  ;;  %s777_s13 = sshll.u32 (!%p205_p10), %s981_s18, 7 }
   0xf   : > { %208 = sbr.rel (%p205_p10) target bundleno = 1030 (0x406), region = 36  ;;  %s676_s26 = scalar_lea.hbm (!%p205_p10), %s1306_s4, %s777_s13 }
  0x10   : > { %s995_s6 = smov (!%p205_p10), [#allocation6]  }
  0x11   : > { %s917_s8 = sshll.u32 (!%p205_p10), %s995_s6, 4  ;;  %s918_s8 = int_to_ptr.vmem [resolvable:$false] %s917_s8 }
  0x14   : > { %v388_v0 = vld [vmem:[%s1305_s3 + $0xf8] sm:$0xff]  ;;  %v387_v1 = vld [vmem:[%s1305_s3 + $0xf0] sm:$0xff]  ;;  %v386_v2 = vld [vmem:[%s1305_s3 + $0xe8] sm:$0xff]  ;;  %v991_v3 = vmov 0.0   ;;  %s1192_s7 = scalar_select %p239_p11, %s981_s18, 1  ;;  %vm992_vm0 = vmmov 0   ;;  %v532_v56 = vlaneseq }
  0x15   : > { %389 = vmatprep.subr.mxu1 %v388_v0  ;;  %801 = vmatprep.subr.mxu0 %v991_v3  ;;  %v273_v4 = vld [vmem:[%s1304_s2 + $0x78] sm:$0xff]  ;;  %v385_v5 = vld [vmem:[%s1305_s3 + $0xe0] sm:$0xff]  ;;  %v272_v7 = vld [vmem:[%s1304_s2 + $0x70] sm:$0xff]  ;;  %vm345_vm1 = vcmask 7168   ;;  %v993_v55 = vmov -inf   ;;  %vm543_vm3 = vcmask 64512  }
  0x16   : > { %390 = vmatpush1.msra.mxu1 %v387_v1  ;;  %802 = vmatpush3.msra.mxu0 %v273_v4  ;;  %v384_v6 = vld [vmem:[%s1305_s3 + $0xd8] sm:$0xff]  ;;  %v383_v8 = vld [vmem:[%s1305_s3 + $0xd0] sm:$0xff]  ;;  %v271_v9 = vld [vmem:[%s1304_s2 + $0x68] sm:$0xff]  ;;  %s773_s30 = sshll.u32 %s1192_s7, 3  ;;  %346 = vst.msk [vmem:[#allocation3] sm:$0xff] %vm345_vm1, %v993_v55  ;;  %v533_v57 = vshrl.u32 %v532_v56, 7 }
  0x17   : > { %391 = vmatprep.subr.mxu1 %v386_v2  ;;  %803 = vmatprep.subr.mxu0 %v991_v3  ;;  %v382_v10 = vld [vmem:[%s1305_s3 + $0xc8] sm:$0xff]  ;;  %v381_v11 = vld [vmem:[%s1305_s3 + $0xc0] sm:$0xff]  ;;  %v380_v13 = vld [vmem:[%s1305_s3 + $0xb8] sm:$0xff]  ;;  %s252_s24 = scalar_lea.vmem %s1303_s1, %s773_s30  ;;  %s245_s10 = scalar_lea.vmem %s1302_s0, %s773_s30  ;;  %347 = vst.msk [vmem:[#allocation4] sm:$0xff] %vm345_vm1, %v991_v3  ;;  %v537_v58 = vand.u32 127, %v532_v56  ;;  %v994_v0 = vmov 0  }
  0x18   : > { %392 = vmatpush1.msra.mxu1 %v385_v5  ;;  %804 = vmatpush3.msra.mxu0 %v272_v7  ;;  %v270_v12 = vld [vmem:[%s1304_s2 + $0x60] sm:$0xff]  ;;  %v379_v14 = vld [vmem:[%s1305_s3 + $0xb0] sm:$0xff]  ;;  %v269_v15 = vld [vmem:[%s1304_s2 + $0x58] sm:$0xff]  ;;  %s236_s30 = sand.u32 1, %s973_s16   ;;  %s919_s18 = scalar_lea.vmem %s918_s8, 256 }
  0x19   : > { %393 = vmatprep.subr.mxu1 %v384_v6  ;;  %805 = vmatprep.subr.mxu0 %v991_v3  ;;  %v378_v16 = vld [vmem:[%s1305_s3 + $0xa8] sm:$0xff]  ;;  %v377_v17 = vld [vmem:[%s1305_s3 + $0xa0] sm:$0xff]  ;;  %v268_v18 = vld [vmem:[%s1304_s2 + $0x50] sm:$0xff]  ;;  %vm540_vm2 = vcmp.le.s32.totalorder %v537_v58, %v533_v57  ;;  %s772_s12 = sshll.u32 %s236_s30, 3  ;;  %s664_s29 = scalar_lea.sflag [#allocation7], %s236_s30 }
  0x1a   : > { %394 = vmatpush1.msra.mxu1 %v383_v8  ;;  %806 = vmatpush3.msra.mxu0 %v271_v9  ;;  %v376_v19 = vld [vmem:[%s1305_s3 + $0x98] sm:$0xff]  ;;  %v375_v20 = vld [vmem:[%s1305_s3 + $0x90] sm:$0xff]  ;;  %v267_v21 = vld [vmem:[%s1304_s2 + $0x48] sm:$0xff]  ;;  %s238_s14 = scalar_lea.vmem [#allocation6], %s772_s12 }
  0x1b   : > { %395 = vmatprep.subr.mxu1 %v382_v10  ;;  %807 = vmatprep.subr.mxu0 %v991_v3  ;;  %v374_v22 = vld [vmem:[%s1305_s3 + $0x88] sm:$0xff]  ;;  %v373_v23 = vld [vmem:[%s1305_s3 + $0x80] sm:$0xff]  ;;  %v372_v25 = vld [vmem:[%s1305_s3 + $0x78] sm:$0xff]  ;;  %s678_s21 = sshll.u32 %s238_s14, 4  ;;  %s679_s21 = int_to_ptr.vmem [resolvable:$true] %s678_s21 }
  0x1c   : > { %396 = vmatpush1.msra.mxu1 %v381_v11  ;;  %808 = vmatpush3.msra.mxu0 %v270_v12  ;;  %v266_v24 = vld [vmem:[%s1304_s2 + $0x40] sm:$0xff]  ;;  %v371_v26 = vld [vmem:[%s1305_s3 + $0x70] sm:$0xff]  ;;  %v265_v27 = vld [vmem:[%s1304_s2 + $0x38] sm:$0xff]  ;;  %s913_s5 = scalar_lea.vmem %s679_s21, 128  ;;  %p920_p1 = scmp.lt.s32.totalorder %s679_s21, %s918_s8 }
  0x1d   : > { %397 = vmatprep.subr.mxu1 %v380_v13  ;;  %809 = vmatprep.subr.mxu0 %v991_v3  ;;  %v370_v28 = vld [vmem:[%s1305_s3 + $0x68] sm:$0xff]  ;;  %v369_v29 = vld [vmem:[%s1305_s3 + $0x60] sm:$0xff]  ;;  %v264_v30 = vld [vmem:[%s1304_s2 + $0x30] sm:$0xff]  ;;  %p914_p12 = scmp.ne.s32.totalorder %s679_s21, %s913_s5  ;;  %p921_p2 = scmp.lt.s32.totalorder %s919_s18, %s913_s5 }
  0x1e   : > { %398 = vmatpush1.msra.mxu1 %v379_v14  ;;  %810 = vmatpush3.msra.mxu0 %v269_v15  ;;  %v368_v31 = vld [vmem:[%s1305_s3 + $0x58] sm:$0xff]  ;;  %v367_v32 = vld [vmem:[%s1305_s3 + $0x50] sm:$0xff]  ;;  %v263_v33 = vld [vmem:[%s1304_s2 + $0x28] sm:$0xff] }
  0x1f   : > { %399 = vmatprep.subr.mxu1 %v378_v16  ;;  %811 = vmatprep.subr.mxu0 %v991_v3  ;;  %v366_v34 = vld [vmem:[%s1305_s3 + $0x48] sm:$0xff]  ;;  %v365_v35 = vld [vmem:[%s1305_s3 + $0x40] sm:$0xff]  ;;  %v364_v37 = vld [vmem:[%s1305_s3 + $0x38] sm:$0xff]  ;;  %p915_p13 = pnand %p914_p12, %p1061_p4  ;;  %p922_p3 = por %p921_p2, %p920_p1 }
  0x20   : > { %400 = vmatpush1.msra.mxu1 %v377_v17  ;;  %812 = vmatpush3.msra.mxu0 %v268_v18  ;;  %v262_v36 = vld [vmem:[%s1304_s2 + $0x20] sm:$0xff]  ;;  %v363_v38 = vld [vmem:[%s1305_s3 + $0x30] sm:$0xff]  ;;  %v261_v39 = vld [vmem:[%s1304_s2 + $0x18] sm:$0xff] }
  0x21   : > { %401 = vmatprep.subr.mxu1 %v376_v19  ;;  %813 = vmatprep.subr.mxu0 %v991_v3  ;;  %v362_v40 = vld [vmem:[%s1305_s3 + $0x28] sm:$0xff]  ;;  %v361_v41 = vld [vmem:[%s1305_s3 + $0x20] sm:$0xff]  ;;  %v260_v42 = vld [vmem:[%s1304_s2 + $0x10] sm:$0xff]  ;;  %p916_p0 = pneg %p915_p13 }
  0x22   : > { %402 = vmatpush1.msra.mxu1 %v375_v20  ;;  %814 = vmatpush3.msra.mxu0 %v267_v21  ;;  %v360_v43 = vld [vmem:[%s1305_s3 + $0x18] sm:$0xff]  ;;  %v359_v44 = vld [vmem:[%s1305_s3 + $0x10] sm:$0xff]  ;;  %v259_v45 = vld [vmem:[%s1304_s2 + $0x8] sm:$0xff] }
  0x23   : > { %403 = vmatprep.subr.mxu1 %v374_v22  ;;  %815 = vmatprep.subr.mxu0 %v991_v3  ;;  %v358_v46 = vld [vmem:[%s1305_s3 + $0x8] sm:$0xff]  ;;  %v357_v47 = vld [vmem:[%s1305_s3] sm:$0xff]  ;;  %p923_p5 = pnand %p922_p3, %p916_p0 }
  0x24   : > { %404 = vmatpush1.msra.mxu1 %v373_v23  ;;  %816 = vmatpush3.msra.mxu0 %v266_v24  ;;  %v356_v48 = vld [vmem:[%s252_s24] sm:$0xff]  ;;  %v559_v12 = vld [vmem:[#allocation4] sm:$0xff] }
  0x25   : > { %405 = vmatprep.subr.mxu1 %v372_v25  ;;  %817 = vmatprep.subr.mxu0 %v991_v3  ;;  %v258_v49 = vld [vmem:[%s1304_s2] sm:$0xff] }
  0x26   : > { %406 = vmatpush1.msra.mxu1 %v371_v26  ;;  %818 = vmatpush3.msra.mxu0 %v265_v27  ;;  %v257_v50 = vld [vmem:[%s245_s10] sm:$0xff] }
  0x27   : > { %407 = vmatprep.subr.mxu1 %v370_v28  ;;  %819 = vmatprep.subr.mxu0 %v991_v3  ;;  %v542_v1 = vld [vmem:[#allocation3] sm:$0xff] }
  0x28   : > { %408 = vmatpush1.msra.mxu1 %v369_v29  ;;  %820 = vmatpush3.msra.mxu0 %v264_v30 }
  0x29   : > { %409 = vmatprep.subr.mxu1 %v368_v31  ;;  %821 = vmatprep.subr.mxu0 %v991_v3 }
  0x2a   : > { %410 = vmatpush1.msra.mxu1 %v367_v32  ;;  %822 = vmatpush3.msra.mxu0 %v263_v33 }
  0x2b   : > { %411 = vmatprep.subr.mxu1 %v366_v34  ;;  %823 = vmatprep.subr.mxu0 %v991_v3 }
  0x2c   : > { %412 = vmatpush1.msra.mxu1 %v365_v35  ;;  %824 = vmatpush3.msra.mxu0 %v262_v36 }
  0x2d   : > { %413 = vmatprep.subr.mxu1 %v364_v37  ;;  %825 = vmatprep.subr.mxu0 %v991_v3 }
  0x2e   : > { %414 = vmatpush1.msra.mxu1 %v363_v38  ;;  %826 = vmatpush3.msra.mxu0 %v261_v39 }
  0x2f   : > { %415 = vmatprep.subr.mxu1 %v362_v40  ;;  %827 = vmatprep.subr.mxu0 %v991_v3 }
  0x30   : > { %416 = vmatpush1.msra.mxu1 %v361_v41  ;;  %828 = vmatpush3.msra.mxu0 %v260_v42 }
  0x31   : > { %417 = vmatprep.subr.mxu1 %v360_v43  ;;  %829 = vmatprep.subr.mxu0 %v991_v3 }
  0x32   : > { %418 = vmatpush1.msra.mxu1 %v359_v44  ;;  %830 = vmatpush3.msra.mxu0 %v259_v45 }
  0x33   : > { %419 = vmatprep.subr.mxu1 %v358_v46  ;;  %453 = vmatprep.mubr.f32.mxu1 %v991_v3 }
  0x34   : > { %420 = vmatpush1.msra.mxu1 %v357_v47  ;;  %831 = vmatprep.subr.mxu0 %v991_v3 }
  0x35   : > { %454 = vmatmul.mubr.f32.vlgmr.msra.gmra.mxu1 %v356_v48  ;;  %832 = vmatpush3.msra.mxu0 %v258_v49 }
  0x36   : > { %833 = vmatprep.mubr.msk.f32.mxu0 %vm992_vm0, %v991_v3  ;;  %836 = vmatprep.subr.mxu0 %v991_v3 }
  0x37   : > { %834 = vmatmul.mubr.f32.vlgmr.msra.gmra.mxu0 %v257_v50  ;;  %841 = vmatprep.subr.mxu1 %v991_v3 }
  0x38   : > { %838 = vmatprep.mubr.msk.f32.mxu0 %vm992_vm0, %v991_v3  ;;  %843 = vmatprep.mubr.msk.f32.mxu1 %vm992_vm0, %v991_v3 }
  0x39   : > { %905 = vset.pattern.permute.xlu0 %v994_v0  ;;  %906 = vset.pattern.permute.xlu1 %v994_v0 }
  0xf5   : > { %v455_v51 = vpop.f32.mrf.mxu1 }
  0xf6   : > { %837 = vmatpush3.xpose.msra.mxu0 %v455_v51 }
  0xf7   : > { %v340_v52 = vpop.f32.mrf.mxu0  ;;  %v457_v53 = vpop.f32.mrf.mxu1 }
  0xf8   : > { %842 = vmatpush3.msra.mxu1 %v457_v53 }
  0xf9   : > { %v835_v54 = vpop.f32.mrf.mxu0  ;;  %839 = vmatmul.mubr.f32.vlgmr.msra.gmra.mxu0 %v340_v52 }
 0x1b9   : > { %v527_v59 = vpop.f32.mrf.mxu0 }
 0x1ba   : > { %v531_v60 = vmul.f32 0.17677669, %v527_v59 }
 0x1bb   : > { %v840_v61 = vpop.f32.mrf.mxu0 }
 0x1bc   : > { %v541_v62 = vsel %vm540_vm2, %v531_v60, -inf }
 0x1bd   : > { %v544_v63 = vsel %vm543_vm3, %v541_v62, -inf }
 0x1be   : > { %545 = vmax.xlane.f32.xlu0 %v544_v63 }
 0x247   : > { %v546_v2 = vpop.xlane.xlu0 %545 }
 0x248   : > { %v547_v4 = vmax.f32 %v542_v1, %v546_v2 }
 0x24a   : > { %v548_v5 = vsub.f32 %v542_v1, %v547_v4  ;;  %649 = vst.msk [vmem:[#allocation3] sm:$0xff] %vm345_vm1, %v547_v4  ;;  %553 = vperm.xlu0 %905, %v547_v4  }
 0x24c   : > { %v549_v9 = vmul.f32 1.442695, %v548_v5 }
 0x2c5   : > { %v554_v3 = vpop.permute.xlu0 %553 }
 0x2c6   : > { %v556_v6 = vsub.f32 %v541_v62, %v554_v3 }
 0x2c8   : > { %v557_v7 = vmul.f32 1.442695, %v556_v6 }
 0x2ca   : > { %907 = vpow2.f32 %v557_v7 }
 0x2cb   : > { %909 = vpow2.f32 %v549_v9 }
 0x2d7   : > { %v908_v8 = vpop.eup %907 }
 0x2d8   : > { %844 = vmatmul.mubr.msk.f32.vlgmr.msra.gmra.mxu1 %vm543_vm3, %v908_v8  ;;  %v561_v10 = vsel %vm543_vm3, %v908_v8, 0.0  ;;  %v910_v11 = vpop.eup %909 }
 0x2d9   : > { %562 = vadd.xlane.f32.xlu1 %v561_v10  ;;  %v560_v13 = vmul.f32 %v910_v11, %v559_v12 }
 0x2ea   : > { %570 = vperm.xlu1 %906, %v910_v11  }
 0x362   : > { %v563_v14 = vpop.xlane.xlu1 %562 }
 0x363   : > { %v564_v15 = vadd.f32 %v563_v14, %v560_v13 }
 0x365   : > { %566 = vst.msk [vmem:[#allocation4] sm:$0xff] %vm345_vm1, %v564_v15 }
 0x366   : > { %v571_v20 = vpop.permute.xlu1 %570 }
 0x367   : > { %v573_v21 = vmul.f32 0.0, %v571_v20 }
 0x36c   : > { %v653_v16 = vld [vmem:[#allocation4] sm:$0xff] }
 0x36d   : > { %911 = vrcp.f32 %v653_v16 }
 0x37a   : > { %v912_v17 = vpop.eup %911 }
 0x37b   : > { %658 = vperm.xlu1 %906, %v912_v17  }
 0x398   : > { %v643_v18 = vpop.f32.mrf.mxu1 }
 0x399   : > { %v647_v22 = vadd.f32 %v643_v18, %v573_v21 }
 0x39a   : > { %v845_v19 = vpop.f32.mrf.mxu1 }
 0x3f6   : > { %v659_v23 = vpop.permute.xlu1 %658 }
 0x3f7   : > { %v661_v24 = vmul.f32 %v659_v23, %v647_v22 }
 0x3f9   : > { %662 = vst [vmem:[%s238_s14] sm:$0xff] %v661_v24 }
 0x3fa   : > { %926 = shalt.err (!%p923_p5)
}
 0x3fb   : > { %s927_s9 = scalar_lea.hbm %s676_s26, 128  ;;  %s931_s7 = scalar_lea.hbm %s1306_s4, 256 }
 0x3fc   : > { %p928_p6 = scmp.ne.s32.totalorder %s676_s26, %s927_s9  ;;  %p932_p10 = scmp.lt.s32.totalorder %s676_s26, %s1306_s4 }
 0x3fd   : > { %p933_p11 = scmp.lt.s32.totalorder %s931_s7, %s927_s9 }
 0x3fe   : > { %p929_p7 = pnand %p928_p6, %p1061_p4 }
 0x3ff   : > { %p934_p12 = por %p933_p11, %p932_p10 }
 0x400   : > { %p930_p9 = pneg %p929_p7 }
 0x402   : > { %p935_p13 = pnand %p934_p12, %p930_p9 }
 0x404   : > { %938 = shalt.err (!%p935_p13)
}
 0x405   : > { %846 = dma.vmem_to_hbm [thread:$0]  (%p1061_p4), %s679_s21, 128, %s676_s26, %s664_s29  }
 0x406 PF: > { %p852_p0 = scmp.ge.s32.totalorder %s989_s20, 2  ;;  %s690_s13 = sand.u32 1, %s969_s15  }
 0x407   : > { %s691_s14 = scalar_lea.sflag [#allocation7], %s690_s13 }
 0x408   : > { %p849_p1 = pnand %p852_p0, %p1068_p8 }
 0x40a   : > { %p850_p2 = pneg %p849_p1 }
 0x40c   : > { %964 = dma.done.wait (%p850_p2), %s691_s14, 128  }
 0x40d   : > { %966 = vsyncadd (%p850_p2), %s691_s14, 4294967168  ;;  %s17_s20 = sadd.s32 1, %s989_s20   ;;  %s1309_s15 = smov %s973_s16 }
 0x40e   : > { %p14_p3 = scmp.ge.s32.totalorder %s17_s20, 4   ;;  %s1310_s16 = smov %s977_s17 }
 0x40f   : > { %s1311_s17 = smov %s1074_s28  ;;  %s1312_s18 = smov %s985_s19 }
 0x410   : > { %s1313_s19 = smov %s1315_s23  ;;  %16 = sbr.rel (!%p14_p3) target bundleno = 4 (0x4), region = 86 }
 0x415   :  { %696 = vsyncpa [#allocation7], 1 }
 0x416   :  { %698 = vsyncpa [#allocation7 + $0x1], 1 }

</bundles_post_ra>
